<compile_context>
chip_gen: v7x
topology: tpu7x:2x2x1
jax: 0.10.0
libtpu: 0.0.40
codegen_flags: <defaults>
</compile_context>

<pallas_src>
import functools

import jax
import jax.numpy as jnp
import numpy as np
from jax import lax
from jax.experimental import pallas as pl
from jax.experimental.pallas import tpu as pltpu


def _round_up(x, m):
    return ((x + m - 1) // m) * m


def rnn_kernel(xs_ref, w_ih_ref, w_hh_ref, w_out_ref, out_ref, xh_ref):
    """xs_ref: [T, TB, D] time-major tile, w_ih: [H, D], w_hh: [H, H],
    w_out: [O, H], out_ref: [TB, O], xh_ref: VMEM scratch [T, TB, H]."""
    T, TB, D = xs_ref.shape
    H = w_hh_ref.shape[0]

    # x @ W^T without materializing W^T: contract dim 1 of both operands.
    dn = (((1,), (1,)), ((), ()))

    # (1) Hoisted input projection: one large MXU matmul for all T*TB rows.
    #     TB is a multiple of 8, so both reshapes are free relayouts.
    x_all = xs_ref[...].reshape(T * TB, D)
    xh_ref[...] = lax.dot_general(
        x_all, w_ih_ref[...], dimension_numbers=dn,
        preferred_element_type=jnp.float32,
    ).reshape(T, TB, H)

    # (2) t == 0: state == 0 branch -> hidden contribution ignored.
    h0 = jnp.clip(xh_ref[0], -1.0, 1.0)

    # (3) Recurrence: a single [TB, H] x [H, H] matmul per step.
    w_hh = w_hh_ref[...]

    def step(t, h):
        hh = lax.dot_general(h, w_hh, dimension_numbers=dn,
                             preferred_element_type=jnp.float32)
        return jnp.clip(xh_ref[t] + hh, -1.0, 1.0)

    # Short sequences: full unroll (LLO visibility); long ones: bound vreg pressure.
    h = lax.fori_loop(1, T, step, h0, unroll=True if T <= 16 else 4)

    # (4) Output projection (nn.Linear(hidden, output, bias=False)).
    out_ref[...] = lax.dot_general(h, w_out_ref[...], dimension_numbers=dn,
                                   preferred_element_type=jnp.float32)


@functools.partial(jax.jit, static_argnames=("batch_tile",))
def rnn_model_forward(xs, w_ih, w_hh, w_out, *, batch_tile=None):
    """xs: [B, T, D_in] float32. Returns [B, output_dim] float32."""
    B, T, D = xs.shape
    H = w_ih.shape[0]
    O = w_out.shape[0]

    # Batch tile: multiple of 8 sublanes. 256 fills the MXU on the recurrent matmul
    # and stays far below v7x's 64 MiB VMEM (sweep 256-1024 on v5e/v6e).
    if batch_tile is None:
        batch_tile = min(256, _round_up(B, 8))
    tb = batch_tile

    Bp = _round_up(B, tb)
    if Bp != B:
        xs = jnp.pad(xs, ((0, Bp - B), (0, 0), (0, 0)))

    xs_tm = jnp.transpose(xs, (1, 0, 2))  # [T, Bp, D] time-major

    out = pl.pallas_call(
        rnn_kernel,
        out_shape=jax.ShapeDtypeStruct((Bp, O), jnp.float32),
        grid=(Bp // tb,),
        in_specs=[
            pl.BlockSpec((T, tb, D), lambda i: (0, i, 0)),  # xs tile (double-buffered)
            pl.BlockSpec((H, D), lambda i: (0, 0)),         # W_ih, VMEM-resident
            pl.BlockSpec((H, H), lambda i: (0, 0)),         # W_hh, VMEM-resident
            pl.BlockSpec((O, H), lambda i: (0, 0)),         # W_out, VMEM-resident
        ],
        out_specs=pl.BlockSpec((tb, O), lambda i: (i, 0)),
        scratch_shapes=[pltpu.VMEM((T, tb, H), jnp.float32)],
        compiler_params=pltpu.CompilerParams(
            dimension_semantics=("parallel",)),
    )(xs_tm, w_ih, w_hh, w_out)

    return out[:B] if Bp != B else out


def rnn_model_reference(xs, w_ih, w_hh, w_out):
    """Pure-JAX reference mirroring the PyTorch loop (state resets per batch row)."""
    B, T, D = xs.shape
    h = jnp.clip(xs[:, 0, :] @ w_ih.T, -1.0, 1.0)
    for t in range(1, T):
        h = jnp.clip(xs[:, t, :] @ w_ih.T + h @ w_hh.T, -1.0, 1.0)
    return h @ w_out.T


if __name__ == "__main__":
    # Small shapes consistent with the module (MNIST rows would be T=28, D=28).
    B, T, D_in, H, O = 12, 8, 28, 128, 10  # hidden_dim=128 is hardcoded in the module

    key = jax.random.PRNGKey(0)
    k_x, k_ih, k_hh, k_out = jax.random.split(key, 4)

    xs = jax.random.normal(k_x, (B, T, D_in), dtype=jnp.float32)
    # nn.Linear-style weights: [out_features, in_features], bias-free.
    w_ih = jax.random.normal(k_ih, (H, D_in), dtype=jnp.float32) * (1.0 / np.sqrt(D_in))
    w_hh = jax.random.normal(k_hh, (H, H), dtype=jnp.float32) * (1.0 / np.sqrt(H))
    w_out = jax.random.normal(k_out, (O, H), dtype=jnp.float32) * (1.0 / np.sqrt(H))

    # batch_tile=8 -> grid of 2 tiles plus a padded-batch remainder: exercises the
    # grid, weight residency, and the B % tile != 0 path at small scale.
    out = rnn_model_forward(xs, w_ih, w_hh, w_out, batch_tile=8)
    out = jax.block_until_ready(out)

    ref = rnn_model_reference(xs, w_ih, w_hh, w_out)
    assert out.shape == (B, O), out.shape
    np.testing.assert_allclose(np.asarray(out), np.asarray(ref), rtol=2e-5, atol=2e-5)

    print("KERNEL_OK")
</pallas_src>

<mosaic_0001>
module attributes {stable_mosaic.version = 11 : i64} {
  func.func @rnn_kernel(%arg0: i32, %arg1: memref<8x8x28xf32, #tpu.memory_space<vmem>>, %arg2: memref<128x28xf32, #tpu.memory_space<vmem>>, %arg3: memref<128x128xf32, #tpu.memory_space<vmem>>, %arg4: memref<10x128xf32, #tpu.memory_space<vmem>>, %arg5: memref<8x10xf32, #tpu.memory_space<vmem>>, %arg6: memref<8x8x128xf32, #tpu.memory_space<vmem>>) attributes {dimension_semantics = [#tpu.dimension_semantics<parallel>], iteration_bounds = array<i64: 2>, scalar_prefetch = 0 : i64, scratch_operands = 1 : i64, tpu.core_type = #tpu.core_type<tc>, window_params = [{transform_indices = @transform_0, window_bounds = array<i64: 8, 8, 28>}, {pipeline_mode = #tpu.pipeline_mode<synchronous>, transform_indices = @transform_1, window_bounds = array<i64: 128, 28>}, {pipeline_mode = #tpu.pipeline_mode<synchronous>, transform_indices = @transform_2, window_bounds = array<i64: 128, 128>}, {pipeline_mode = #tpu.pipeline_mode<synchronous>, transform_indices = @transform_3, window_bounds = array<i64: 10, 128>}, {transform_indices = @transform_4, window_bounds = array<i64: 8, 10>}]} {
    %c0 = arith.constant 0 : index
    %c0_0 = arith.constant 0 : index
    %c0_1 = arith.constant 0 : index
    %0 = vector.load %arg1[%c0, %c0_0, %c0_1] : memref<8x8x28xf32, #tpu.memory_space<vmem>>, vector<8x8x28xf32>
    %1 = vector.shape_cast %0 : vector<8x8x28xf32> to vector<64x28xf32>
    %c0_2 = arith.constant 0 : index
    %c0_3 = arith.constant 0 : index
    %2 = vector.load %arg2[%c0_2, %c0_3] : memref<128x28xf32, #tpu.memory_space<vmem>>, vector<128x28xf32>
    %cst = arith.constant dense<0.000000e+00> : vector<64x128xf32>
    %3 = tpu.matmul %1, %2, %cst {dimension_numbers = #tpu.dot_dimension_numbers<[1], [1], [0], [0], [0, 0, 1, 0], [], []>} : vector<64x28xf32>, vector<128x28xf32>, vector<64x128xf32> -> vector<64x128xf32>
    %4 = vector.shape_cast %3 : vector<64x128xf32> to vector<8x8x128xf32>
    %c0_4 = arith.constant 0 : index
    %c0_5 = arith.constant 0 : index
    %c0_6 = arith.constant 0 : index
    %5 = vector.load %arg6[%c0_4, %c0_5, %c0_6] : memref<8x8x128xf32, #tpu.memory_space<vmem>>, vector<8x8x128xf32>
    tpu.vector_store %arg6[%c0_4, %c0_5, %c0_6], %4 {strides = array<i32>} : memref<8x8x128xf32, #tpu.memory_space<vmem>>, vector<8x8x128xf32>,
    %c0_7 = arith.constant 0 : index
    %c0_8 = arith.constant 0 : index
    %c0_9 = arith.constant 0 : index
    %6 = vector.load %arg6[%c0_7, %c0_8, %c0_9] : memref<8x8x128xf32, #tpu.memory_space<vmem>>, vector<1x8x128xf32>
    %7 = vector.shape_cast %6 : vector<1x8x128xf32> to vector<8x128xf32>
    %cst_10 = arith.constant -1.000000e+00 : f32
    %cst_11 = arith.constant 1.000000e+00 : f32
    %8 = vector.broadcast %cst_10 : f32 to vector<8x128xf32>
    %9 = arith.maximumf %8, %7 : vector<8x128xf32>
    %10 = vector.broadcast %cst_11 : f32 to vector<8x128xf32>
    %11 = arith.minimumf %10, %9 : vector<8x128xf32>
    %c0_12 = arith.constant 0 : index
    %c0_13 = arith.constant 0 : index
    %12 = vector.load %arg3[%c0_12, %c0_13] : memref<128x128xf32, #tpu.memory_space<vmem>>, vector<128x128xf32>
    %c1_i32 = arith.constant 1 : i32
    %cst_14 = arith.constant dense<0.000000e+00> : vector<8x128xf32>
    %13 = tpu.matmul %11, %12, %cst_14 {dimension_numbers = #tpu.dot_dimension_numbers<[1], [1], [0], [0], [0, 0, 1, 0], [], []>} : vector<8x128xf32>, vector<128x128xf32>, vector<8x128xf32> -> vector<8x128xf32>
    %14 = arith.index_cast %c1_i32 : i32 to index
    %c0_15 = arith.constant 0 : index
    %c0_16 = arith.constant 0 : index
    %15 = vector.load %arg6[%14, %c0_15, %c0_16] : memref<8x8x128xf32, #tpu.memory_space<vmem>>, vector<1x8x128xf32>
    %16 = vector.shape_cast %15 : vector<1x8x128xf32> to vector<8x128xf32>
    %17 = arith.addf %16, %13 : vector<8x128xf32>
    %cst_17 = arith.constant -1.000000e+00 : f32
    %cst_18 = arith.constant 1.000000e+00 : f32
    %18 = vector.broadcast %cst_17 : f32 to vector<8x128xf32>
    %19 = arith.maximumf %18, %17 : vector<8x128xf32>
    %20 = vector.broadcast %cst_18 : f32 to vector<8x128xf32>
    %21 = arith.minimumf %20, %19 : vector<8x128xf32>
    %c2_i32 = arith.constant 2 : i32
    %cst_19 = arith.constant dense<0.000000e+00> : vector<8x128xf32>
    %22 = tpu.matmul %21, %12, %cst_19 {dimension_numbers = #tpu.dot_dimension_numbers<[1], [1], [0], [0], [0, 0, 1, 0], [], []>} : vector<8x128xf32>, vector<128x128xf32>, vector<8x128xf32> -> vector<8x128xf32>
    %23 = arith.index_cast %c2_i32 : i32 to index
    %c0_20 = arith.constant 0 : index
    %c0_21 = arith.constant 0 : index
    %24 = vector.load %arg6[%23, %c0_20, %c0_21] : memref<8x8x128xf32, #tpu.memory_space<vmem>>, vector<1x8x128xf32>
    %25 = vector.shape_cast %24 : vector<1x8x128xf32> to vector<8x128xf32>
    %26 = arith.addf %25, %22 : vector<8x128xf32>
    %cst_22 = arith.constant -1.000000e+00 : f32
    %cst_23 = arith.constant 1.000000e+00 : f32
    %27 = vector.broadcast %cst_22 : f32 to vector<8x128xf32>
    %28 = arith.maximumf %27, %26 : vector<8x128xf32>
    %29 = vector.broadcast %cst_23 : f32 to vector<8x128xf32>
    %30 = arith.minimumf %29, %28 : vector<8x128xf32>
    %c3_i32 = arith.constant 3 : i32
    %cst_24 = arith.constant dense<0.000000e+00> : vector<8x128xf32>
    %31 = tpu.matmul %30, %12, %cst_24 {dimension_numbers = #tpu.dot_dimension_numbers<[1], [1], [0], [0], [0, 0, 1, 0], [], []>} : vector<8x128xf32>, vector<128x128xf32>, vector<8x128xf32> -> vector<8x128xf32>
    %32 = arith.index_cast %c3_i32 : i32 to index
    %c0_25 = arith.constant 0 : index
    %c0_26 = arith.constant 0 : index
    %33 = vector.load %arg6[%32, %c0_25, %c0_26] : memref<8x8x128xf32, #tpu.memory_space<vmem>>, vector<1x8x128xf32>
    %34 = vector.shape_cast %33 : vector<1x8x128xf32> to vector<8x128xf32>
    %35 = arith.addf %34, %31 : vector<8x128xf32>
    %cst_27 = arith.constant -1.000000e+00 : f32
    %cst_28 = arith.constant 1.000000e+00 : f32
    %36 = vector.broadcast %cst_27 : f32 to vector<8x128xf32>
    %37 = arith.maximumf %36, %35 : vector<8x128xf32>
    %38 = vector.broadcast %cst_28 : f32 to vector<8x128xf32>
    %39 = arith.minimumf %38, %37 : vector<8x128xf32>
    %c4_i32 = arith.constant 4 : i32
    %cst_29 = arith.constant dense<0.000000e+00> : vector<8x128xf32>
    %40 = tpu.matmul %39, %12, %cst_29 {dimension_numbers = #tpu.dot_dimension_numbers<[1], [1], [0], [0], [0, 0, 1, 0], [], []>} : vector<8x128xf32>, vector<128x128xf32>, vector<8x128xf32> -> vector<8x128xf32>
    %41 = arith.index_cast %c4_i32 : i32 to index
    %c0_30 = arith.constant 0 : index
    %c0_31 = arith.constant 0 : index
    %42 = vector.load %arg6[%41, %c0_30, %c0_31] : memref<8x8x128xf32, #tpu.memory_space<vmem>>, vector<1x8x128xf32>
    %43 = vector.shape_cast %42 : vector<1x8x128xf32> to vector<8x128xf32>
    %44 = arith.addf %43, %40 : vector<8x128xf32>
    %cst_32 = arith.constant -1.000000e+00 : f32
    %cst_33 = arith.constant 1.000000e+00 : f32
    %45 = vector.broadcast %cst_32 : f32 to vector<8x128xf32>
    %46 = arith.maximumf %45, %44 : vector<8x128xf32>
    %47 = vector.broadcast %cst_33 : f32 to vector<8x128xf32>
    %48 = arith.minimumf %47, %46 : vector<8x128xf32>
    %c5_i32 = arith.constant 5 : i32
    %cst_34 = arith.constant dense<0.000000e+00> : vector<8x128xf32>
    %49 = tpu.matmul %48, %12, %cst_34 {dimension_numbers = #tpu.dot_dimension_numbers<[1], [1], [0], [0], [0, 0, 1, 0], [], []>} : vector<8x128xf32>, vector<128x128xf32>, vector<8x128xf32> -> vector<8x128xf32>
    %50 = arith.index_cast %c5_i32 : i32 to index
    %c0_35 = arith.constant 0 : index
    %c0_36 = arith.constant 0 : index
    %51 = vector.load %arg6[%50, %c0_35, %c0_36] : memref<8x8x128xf32, #tpu.memory_space<vmem>>, vector<1x8x128xf32>
    %52 = vector.shape_cast %51 : vector<1x8x128xf32> to vector<8x128xf32>
    %53 = arith.addf %52, %49 : vector<8x128xf32>
    %cst_37 = arith.constant -1.000000e+00 : f32
    %cst_38 = arith.constant 1.000000e+00 : f32
    %54 = vector.broadcast %cst_37 : f32 to vector<8x128xf32>
    %55 = arith.maximumf %54, %53 : vector<8x128xf32>
    %56 = vector.broadcast %cst_38 : f32 to vector<8x128xf32>
    %57 = arith.minimumf %56, %55 : vector<8x128xf32>
    %c6_i32 = arith.constant 6 : i32
    %cst_39 = arith.constant dense<0.000000e+00> : vector<8x128xf32>
    %58 = tpu.matmul %57, %12, %cst_39 {dimension_numbers = #tpu.dot_dimension_numbers<[1], [1], [0], [0], [0, 0, 1, 0], [], []>} : vector<8x128xf32>, vector<128x128xf32>, vector<8x128xf32> -> vector<8x128xf32>
    %59 = arith.index_cast %c6_i32 : i32 to index
    %c0_40 = arith.constant 0 : index
    %c0_41 = arith.constant 0 : index
    %60 = vector.load %arg6[%59, %c0_40, %c0_41] : memref<8x8x128xf32, #tpu.memory_space<vmem>>, vector<1x8x128xf32>
    %61 = vector.shape_cast %60 : vector<1x8x128xf32> to vector<8x128xf32>
    %62 = arith.addf %61, %58 : vector<8x128xf32>
    %cst_42 = arith.constant -1.000000e+00 : f32
    %cst_43 = arith.constant 1.000000e+00 : f32
    %63 = vector.broadcast %cst_42 : f32 to vector<8x128xf32>
    %64 = arith.maximumf %63, %62 : vector<8x128xf32>
    %65 = vector.broadcast %cst_43 : f32 to vector<8x128xf32>
    %66 = arith.minimumf %65, %64 : vector<8x128xf32>
    %c7_i32 = arith.constant 7 : i32
    %cst_44 = arith.constant dense<0.000000e+00> : vector<8x128xf32>
    %67 = tpu.matmul %66, %12, %cst_44 {dimension_numbers = #tpu.dot_dimension_numbers<[1], [1], [0], [0], [0, 0, 1, 0], [], []>} : vector<8x128xf32>, vector<128x128xf32>, vector<8x128xf32> -> vector<8x128xf32>
    %68 = arith.index_cast %c7_i32 : i32 to index
    %c0_45 = arith.constant 0 : index
    %c0_46 = arith.constant 0 : index
    %69 = vector.load %arg6[%68, %c0_45, %c0_46] : memref<8x8x128xf32, #tpu.memory_space<vmem>>, vector<1x8x128xf32>
    %70 = vector.shape_cast %69 : vector<1x8x128xf32> to vector<8x128xf32>
    %71 = arith.addf %70, %67 : vector<8x128xf32>
    %cst_47 = arith.constant -1.000000e+00 : f32
    %cst_48 = arith.constant 1.000000e+00 : f32
    %72 = vector.broadcast %cst_47 : f32 to vector<8x128xf32>
    %73 = arith.maximumf %72, %71 : vector<8x128xf32>
    %74 = vector.broadcast %cst_48 : f32 to vector<8x128xf32>
    %75 = arith.minimumf %74, %73 : vector<8x128xf32>
    %c7_i32_49 = arith.constant 7 : i32
    %c0_50 = arith.constant 0 : index
    %c0_51 = arith.constant 0 : index
    %76 = vector.load %arg4[%c0_50, %c0_51] : memref<10x128xf32, #tpu.memory_space<vmem>>, vector<10x128xf32>
    %cst_52 = arith.constant dense<0.000000e+00> : vector<8x10xf32>
    %77 = tpu.matmul %75, %76, %cst_52 {dimension_numbers = #tpu.dot_dimension_numbers<[1], [1], [0], [0], [0, 0, 1, 0], [], []>} : vector<8x128xf32>, vector<10x128xf32>, vector<8x10xf32> -> vector<8x10xf32>
    %c0_53 = arith.constant 0 : index
    %c0_54 = arith.constant 0 : index
    %78 = vector.load %arg5[%c0_53, %c0_54] : memref<8x10xf32, #tpu.memory_space<vmem>>, vector<8x10xf32>
    tpu.vector_store %arg5[%c0_53, %c0_54], %77 {strides = array<i32>} : memref<8x10xf32, #tpu.memory_space<vmem>>, vector<8x10xf32>,
    return
  }
  func.func @transform_0(%arg0: i32) -> (i32, i32, i32) {
    %c0_i32 = arith.constant 0 : i32
    %c0_i32_0 = arith.constant 0 : i32
    %c0_i32_1 = arith.constant 0 : i32
    return %c0_i32, %arg0, %c0_i32_0 : i32, i32, i32
  }
  func.func @transform_1(%arg0: i32) -> (i32, i32) {
    %c0_i32 = arith.constant 0 : i32
    %c0_i32_0 = arith.constant 0 : i32
    %c0_i32_1 = arith.constant 0 : i32
    return %c0_i32, %c0_i32_0 : i32, i32
  }
  func.func @transform_2(%arg0: i32) -> (i32, i32) {
    %c0_i32 = arith.constant 0 : i32
    %c0_i32_0 = arith.constant 0 : i32
    %c0_i32_1 = arith.constant 0 : i32
    return %c0_i32, %c0_i32_0 : i32, i32
  }
  func.func @transform_3(%arg0: i32) -> (i32, i32) {
    %c0_i32 = arith.constant 0 : i32
    %c0_i32_0 = arith.constant 0 : i32
    %c0_i32_1 = arith.constant 0 : i32
    return %c0_i32, %c0_i32_0 : i32, i32
  }
  func.func @transform_4(%arg0: i32) -> (i32, i32) {
    %c0_i32 = arith.constant 0 : i32
    %c0_i32_0 = arith.constant 0 : i32
    return %arg0, %c0_i32 : i32, i32
  }
}

</mosaic_0001>

<bundles_post_ra>
// kernel: rnn_model_forward.1
= control target key start
LH: loop header
LB: loop body
LE: loop exit
PB: predicated region body
PF: predicated region fallthrough
CT: control target
= control target key end

     0   :  { %9 = vsyncpa [#allocation5], 0  ;;  %s2430_s0 = inlined_call_operand.vmem [shape: f32[8,16,28], index: 0, kind: input, shape index: {}]   ;;  %s2431_s1 = inlined_call_operand.vmem [shape: f32[128,28], index: 1, kind: input, shape index: {}]   ;;  %s2432_s2 = inlined_call_operand.vmem [shape: f32[128,128], index: 2, kind: input, shape index: {}]   ;;  %s2433_s3 = inlined_call_operand.vmem [shape: f32[10,128], index: 3, kind: input, shape index: {}]   ;;  %s2434_s4 = inlined_call_operand.hbm [shape: f32[16,10], index: 4, kind: output, shape index: {}]  }
   0x1   :  { %11 = vsyncpa [#allocation5 + $0x1], 0  ;;  %s2005_s15 = smov 0   ;;  %s2007_s16 = smov 0  }
   0x2   :  { %s2009_s17 = smov 0   ;;  %s2011_s18 = smov 0  }
   0x3 LB: > { %s1164_s19 = sadd.s32 4294967295, %s1974_s18   ;;  %s1165_s20 = sadd.s32 4294967294, %s1974_s18   ;;  %s1974_s18 = sphi %s2011_s18, %s2442_s18   ;;  %s1970_s17 = sphi %s2009_s17, %s2441_s17   ;;  %s1966_s16 = sphi %s2007_s16, %s2440_s16   ;;  %s1962_s15 = sphi %s2005_s15, %s2439_s15  }
   0x4   : > { %s2028_s21 = sadd.s32 1, %s1974_s18   ;;  %s24_s22 = sadd.s32 1, %s1970_s17 }
   0x5   : > { %s21_s23 = ssub.s32 %s1974_s18, %s2028_s21  ;;  %p31_p0 = scmp.ne.s32.totalorder %s1970_s17, %s1966_s16 }
   0x6   : > { %p22_p1 = scmp.eq.s32.totalorder %s21_s23, 0  ;;  %p32_p2 = scmp.eq.s32.totalorder %s1974_s18, 0 }
   0x7   : > { %p124_p3 = scmp.eq.s32.totalorder %s1164_s19, 1  ;;  %p129_p4 = scmp.ne.s32.totalorder %s1966_s16, %s1962_s15 }
   0x8   : > { %s2041_s24 = scalar_select %p22_p1, %s1970_s17, %s24_s22  }
   0x9   : > { %p33_p5 = por %p32_p2, %p31_p0  ;;  %p2043_p6 = por %p124_p3, %p31_p0 }
   0xa   : > { %p130_p7 = scmp.eq.s32.totalorder %s1165_s20, 1  ;;  %p1167_p9 = scmp.ge.s32.totalorder %s1974_s18, 2 }
   0xc   : > { %p2047_p8 = por %p130_p7, %p129_p4  ;;  %155 = sbr.rel (%p1167_p9) target bundleno = 27 (0x1b), region = 28 }
  0x13   : > { %158 = sbr.rel (!%p33_p5) target bundleno = 27 (0x1b), region = 32  ;;  %s160_s27 = sand.u32 (%p33_p5), 1, %s1970_s17  }
  0x14   : > { %s1169_s28 = sshll.u32 (%p33_p5), %s1974_s18, 3  ;;  %s1168_s29 = sshll.u32 (%p33_p5), %s160_s27, 6 }
  0x15   : > { %s164_s6 = scalar_lea.vmem (%p33_p5), %s2430_s0, %s1169_s28  ;;  %s162_s7 = scalar_lea.vmem (%p33_p5), [#allocation3], %s1168_s29 }
  0x16   : > { %v206_v0 = vld [vmem:[%s164_s6] sm:$0xff] (%p33_p5)  ;;  %v208_v1 = vld [vmem:[%s164_s6 + $0x10] sm:$0xff] (%p33_p5) }
  0x17   : > { %v210_v2 = vld [vmem:[%s164_s6 + $0x20] sm:$0xff] (%p33_p5)  ;;  %207 = vst [vmem:[%s162_s7] sm:$0xff] (%p33_p5), %v206_v0  ;;  %209 = vst [vmem:[%s162_s7 + $0x8] sm:$0xff] (%p33_p5), %v208_v1  ;;  %v212_v3 = vld [vmem:[%s164_s6 + $0x30] sm:$0xff] (%p33_p5) }
  0x18   : > { %211 = vst [vmem:[%s162_s7 + $0x10] sm:$0xff] (%p33_p5), %v210_v2  ;;  %v214_v4 = vld [vmem:[%s164_s6 + $0x40] sm:$0xff] (%p33_p5)  ;;  %v216_v5 = vld [vmem:[%s164_s6 + $0x50] sm:$0xff] (%p33_p5)  ;;  %213 = vst [vmem:[%s162_s7 + $0x18] sm:$0xff] (%p33_p5), %v212_v3 }
  0x19   : > { %215 = vst [vmem:[%s162_s7 + $0x20] sm:$0xff] (%p33_p5), %v214_v4  ;;  %217 = vst [vmem:[%s162_s7 + $0x28] sm:$0xff] (%p33_p5), %v216_v5  ;;  %v218_v6 = vld [vmem:[%s164_s6 + $0x60] sm:$0xff] (%p33_p5)  ;;  %v220_v7 = vld [vmem:[%s164_s6 + $0x70] sm:$0xff] (%p33_p5) }
  0x1a   : > { %219 = vst [vmem:[%s162_s7 + $0x30] sm:$0xff] %v218_v6  ;;  %221 = vst [vmem:[%s162_s7 + $0x38] sm:$0xff] %v220_v7 }
  0x1b PF: > { %p1170_p10 = scmp.ge.s32.totalorder %s1974_s18, 1  ;;  %p226_p11 = scmp.lt.s32.totalorder %s1974_s18, 3 }
  0x1d   : > { %p227_p12 = pnand %p1170_p10, %p226_p11 }
  0x1e   : > { %v266_v8 = vld [vmem:[%s2431_s1] sm:$0xff] (!%p227_p12)  ;;  %v267_v9 = vld [vmem:[%s2431_s1 + $0x8] sm:$0xff] (!%p227_p12)  ;;  %vm282_vm0 = vcmask (!%p227_p12), 228352   ;;  %v268_v10 = vld [vmem:[%s2431_s1 + $0x10] sm:$0xff] (!%p227_p12)  ;;  %s2071_s14 = sand.u32 (!%p227_p12), 1, %s1966_s16   ;;  %v1976_v14 = vmov (!%p227_p12), 0.0|0.0  }
  0x1f   : > { %230 = sbr.rel (%p227_p12) target bundleno = 2050 (0x802), region = 70  ;;  %v1651_v11 = vpack.c.bf16 (!%p227_p12), %v267_v9, %v266_v8  ;;  %vm2075_vm1 = vmpackc.low (!%p227_p12), %vm282_vm0, %vm282_vm0  ;;  %v269_v13 = vld [vmem:[%s2431_s1 + $0x18] sm:$0xff] (!%p227_p12)  ;;  %s1171_s23 = sshll.u32 (!%p227_p12), %s2071_s14, 6  ;;  %1699 = vmatprep.subr.bf16.mxu1 (!%p227_p12), %v1976_v14  ;;  %v270_v16 = vld [vmem:[%s2431_s1 + $0x20] sm:$0xff] (!%p227_p12)  ;;  %vm1977_vm2 = vmmov (!%p227_p12), 0   ;;  %v1978_v60 = vmov (!%p227_p12), 0.0  }
  0x20   : > { %v1657_v15 = vpack.c.bf16 (!%p227_p12), %v269_v13, %v268_v10  ;;  %s2093_s29 = scalar_lea.vmem (!%p227_p12), [#allocation3], %s1171_s23  ;;  %v271_v18 = vld [vmem:[%s2431_s1 + $0x28] sm:$0xff] (!%p227_p12)  ;;  %v471_v19 = vld [vmem:[%s2432_s2] sm:$0xff] (!%p227_p12)  ;;  %v473_v23 = vld [vmem:[%s2432_s2 + $0x10] sm:$0xff] (!%p227_p12)  ;;  %1431 = vmatprep.mubr.msk.f32.mxu1 (!%p227_p12), %vm1977_vm2, %v1978_v60  ;;  %s1172_s23 = sshll.u32 (!%p227_p12), %s2071_s14, 3  ;;  %vm1084_vm3 = vcmask (!%p227_p12), 80896  }
  0x21   : > { %1653 = vmatprep.subr.msk.bf16.mxu0 (!%p227_p12), %vm2075_vm1, %v1651_v11  ;;  %v258_v17 = vld [vmem:[%s2093_s29] sm:$0xff] (!%p227_p12)  ;;  %v472_v20 = vld [vmem:[%s2432_s2 + $0x8] sm:$0xff] (!%p227_p12)  ;;  %v1663_v22 = vpack.c.bf16 (!%p227_p12), %v271_v18, %v270_v16  ;;  %v474_v24 = vld [vmem:[%s2432_s2 + $0x18] sm:$0xff] (!%p227_p12)  ;;  %s1206_s27 = sshll.u32 (!%p227_p12), %s1164_s19, 7  ;;  %s257_s28 = scalar_lea.vmem (!%p227_p12), [#allocation4], %s1172_s23 }
  0x22   : > { %1656 = vmatpush3.bf16.xpose.msk.msra.mxu0 (!%p227_p12), %vm2075_vm1, %v1651_v11  ;;  %1387 = vmatprep.mubr.msk.f32.mxu0 (!%p227_p12), %vm282_vm0, %v258_v17  ;;  %v2106_v21 = vpack.c.bf16 (!%p227_p12), %v472_v20, %v471_v19  ;;  %v2120_v25 = vpack.c.bf16 (!%p227_p12), %v474_v24, %v473_v23  ;;  %v272_v26 = vld [vmem:[%s2431_s1 + $0x30] sm:$0xff] (!%p227_p12)  ;;  %v273_v27 = vld [vmem:[%s2431_s1 + $0x38] sm:$0xff] (!%p227_p12)  ;;  %v475_v29 = vld [vmem:[%s2432_s2 + $0x20] sm:$0xff] (!%p227_p12)  ;;  %s1100_s30 = sshll.u32 (!%p227_p12), %s257_s28, 4  ;;  %s2386_s7 = scalar_lea.hbm (!%p227_p12), %s2434_s4, %s1206_s27  ;;  %s2388_s30 = int_to_ptr.vmem [resolvable:$true] %s1100_s30 }
  0x23   : > { %1659 = vmatprep.subr.msk.bf16.mxu0 (!%p227_p12), %vm2075_vm1, %v1657_v15  ;;  %v1669_v28 = vpack.c.bf16 (!%p227_p12), %v273_v27, %v272_v26  ;;  %v476_v30 = vld [vmem:[%s2432_s2 + $0x28] sm:$0xff] (!%p227_p12)  ;;  %v274_v32 = vld [vmem:[%s2431_s1 + $0x40] sm:$0xff] (!%p227_p12)  ;;  %v477_v35 = vld [vmem:[%s2432_s2 + $0x30] sm:$0xff] (!%p227_p12)  ;;  %s1087_s8 = scalar_lea.sflag (!%p227_p12), [#allocation5], %s2071_s14  ;;  %s1912_s9 = scalar_lea.vmem (!%p227_p12), %s2388_s30, 128 }
  0x24   : > { %1701 = vmatpush3.bf16.xpose.msra.mxu1 (!%p227_p12), %v2106_v21  ;;  %v2140_v31 = vpack.c.bf16 (!%p227_p12), %v476_v30, %v475_v29  ;;  %v275_v33 = vld [vmem:[%s2431_s1 + $0x48] sm:$0xff] (!%p227_p12)  ;;  %v478_v36 = vld [vmem:[%s2432_s2 + $0x38] sm:$0xff] (!%p227_p12)  ;;  %v276_v38 = vld [vmem:[%s2431_s1 + $0x50] sm:$0xff] (!%p227_p12)  ;;  %p1913_p13 = scmp.ne.s32.totalorder (!%p227_p12), %s2388_s30, %s1912_s9  ;;  %s1979_s19 = smov (!%p227_p12), [#allocation4]  }
  0x25   : > { %1702 = vmatprep.subr.bf16.mxu1 (!%p227_p12), %v1976_v14  ;;  %v1675_v34 = vpack.c.bf16 (!%p227_p12), %v275_v33, %v274_v32  ;;  %v2160_v37 = vpack.c.bf16 (!%p227_p12), %v478_v36, %v477_v35  ;;  %v277_v39 = vld [vmem:[%s2431_s1 + $0x58] sm:$0xff] (!%p227_p12)  ;;  %v479_v41 = vld [vmem:[%s2432_s2 + $0x40] sm:$0xff] (!%p227_p12)  ;;  %v480_v42 = vld [vmem:[%s2432_s2 + $0x48] sm:$0xff] (!%p227_p12)  ;;  %s1916_s10 = sshll.u32 (!%p227_p12), %s1979_s19, 4  ;;  %s1917_s10 = int_to_ptr.vmem [resolvable:$false] %s1916_s10 }
  0x26   : > { %v1681_v40 = vpack.c.bf16 %v277_v39, %v276_v38  ;;  %v2180_v43 = vpack.c.bf16 %v480_v42, %v479_v41  ;;  %v278_v44 = vld [vmem:[%s2431_s1 + $0x60] sm:$0xff]  ;;  %v279_v45 = vld [vmem:[%s2431_s1 + $0x68] sm:$0xff]  ;;  %v481_v47 = vld [vmem:[%s2432_s2 + $0x50] sm:$0xff]  ;;  %p1914_p0 = pnand %p1913_p13, %p2043_p6  ;;  %s1918_s11 = scalar_lea.vmem %s1917_s10, 256 }
  0x27   : > { %v1687_v46 = vpack.c.bf16 %v279_v45, %v278_v44  ;;  %v482_v48 = vld [vmem:[%s2432_s2 + $0x58] sm:$0xff]  ;;  %v280_v50 = vld [vmem:[%s2431_s1 + $0x70] sm:$0xff]  ;;  %v483_v53 = vld [vmem:[%s2432_s2 + $0x60] sm:$0xff]  ;;  %p1919_p2 = scmp.lt.s32.totalorder %s2388_s30, %s1917_s10  ;;  %p1920_p3 = scmp.lt.s32.totalorder %s1918_s11, %s1912_s9 }
  0x28   : > { %v2200_v49 = vpack.c.bf16 %v482_v48, %v481_v47  ;;  %v281_v51 = vld [vmem:[%s2431_s1 + $0x78] sm:$0xff]  ;;  %v484_v54 = vld [vmem:[%s2432_s2 + $0x68] sm:$0xff]  ;;  %v485_v56 = vld [vmem:[%s2432_s2 + $0x70] sm:$0xff]  ;;  %p1915_p1 = pneg %p1914_p0 }
  0x29   : > { %v1693_v52 = vpack.c.bf16 %v281_v51, %v280_v50  ;;  %v2220_v55 = vpack.c.bf16 %v484_v54, %v483_v53  ;;  %v486_v57 = vld [vmem:[%s2432_s2 + $0x78] sm:$0xff]  ;;  %v259_v59 = vld [vmem:[%s2093_s29 + $0x8] sm:$0xff]  ;;  %v260_v61 = vld [vmem:[%s2093_s29 + $0x10] sm:$0xff]  ;;  %p1921_p4 = por %p1920_p3, %p1919_p2 }
  0x2a   : > { %1662 = vmatpush3.bf16.xpose.msk.msra.mxu0 %vm2075_vm1, %v1657_v15  ;;  %v2232_v58 = vpack.c.bf16 %v486_v57, %v485_v56  ;;  %v261_v62 = vld [vmem:[%s2093_s29 + $0x18] sm:$0xff]  ;;  %v262_v63 = vld [vmem:[%s2093_s29 + $0x20] sm:$0xff]  ;;  %v263_v0 = vld [vmem:[%s2093_s29 + $0x28] sm:$0xff] }
  0x2b   : > { %1665 = vmatprep.subr.msk.bf16.mxu0 %vm2075_vm1, %v1663_v22  ;;  %v264_v1 = vld [vmem:[%s2093_s29 + $0x30] sm:$0xff]  ;;  %v265_v2 = vld [vmem:[%s2093_s29 + $0x38] sm:$0xff]  ;;  %v1012_v33 = vld [vmem:[%s2433_s3] sm:$0xff]  ;;  %p1922_p5 = pnand %p1921_p4, %p1915_p1 }
  0x2c   : > { %1704 = vmatpush3.bf16.xpose.msra.mxu1 %v2120_v25 }
  0x2d   : > { %1705 = vmatprep.subr.bf16.mxu1 %v1976_v14 }
  0x32   : > { %1668 = vmatpush3.bf16.xpose.msk.msra.mxu0 %vm2075_vm1, %v1663_v22 }
  0x33   : > { %1671 = vmatprep.subr.msk.bf16.mxu0 %vm2075_vm1, %v1669_v28 }
  0x34   : > { %1707 = vmatpush3.bf16.xpose.msra.mxu1 %v2140_v31 }
  0x35   : > { %1708 = vmatprep.subr.bf16.mxu1 %v1976_v14 }
  0x3a   : > { %1674 = vmatpush3.bf16.xpose.msk.msra.mxu0 %vm2075_vm1, %v1669_v28 }
  0x3b   : > { %1677 = vmatprep.subr.msk.bf16.mxu0 %vm2075_vm1, %v1675_v34 }
  0x3c   : > { %1710 = vmatpush3.bf16.xpose.msra.mxu1 %v2160_v37 }
  0x3d   : > { %1711 = vmatprep.subr.bf16.mxu1 %v1976_v14 }
  0x42   : > { %1680 = vmatpush3.bf16.xpose.msk.msra.mxu0 %vm2075_vm1, %v1675_v34 }
  0x43   : > { %1683 = vmatprep.subr.msk.bf16.mxu0 %vm2075_vm1, %v1681_v40 }
  0x44   : > { %1713 = vmatpush3.bf16.xpose.msra.mxu1 %v2180_v43 }
  0x45   : > { %1714 = vmatprep.subr.bf16.mxu1 %v1976_v14 }
  0x4a   : > { %1686 = vmatpush3.bf16.xpose.msk.msra.mxu0 %vm2075_vm1, %v1681_v40 }
  0x4b   : > { %1689 = vmatprep.subr.msk.bf16.mxu0 %vm2075_vm1, %v1687_v46 }
  0x4c   : > { %1716 = vmatpush3.bf16.xpose.msra.mxu1 %v2200_v49 }
  0x4d   : > { %1717 = vmatprep.subr.bf16.mxu1 %v1976_v14 }
  0x52   : > { %1692 = vmatpush3.bf16.xpose.msk.msra.mxu0 %vm2075_vm1, %v1687_v46 }
  0x53   : > { %1695 = vmatprep.subr.msk.bf16.mxu0 %vm2075_vm1, %v1693_v52 }
  0x54   : > { %1719 = vmatpush3.bf16.xpose.msra.mxu1 %v2220_v55 }
  0x55   : > { %1720 = vmatprep.subr.bf16.mxu1 %v1976_v14 }
  0x5a   : > { %1698 = vmatpush3.bf16.xpose.msk.msra.mxu0 %vm2075_vm1, %v1693_v52 }
  0x5b   : > { %1723 = vmatprep.subr.bf16.mxu0 %v1976_v14 }
  0x5c   : > { %1722 = vmatpush3.bf16.xpose.msra.mxu1 %v2232_v58 }
  0x5d   : > { %1747 = vmatprep.subr.bf16.mxu1 %v1976_v14 }
  0x61   : > { %1388 = vmatmul.mubr.msk.f32.vlgmr.msra.gmra.mrb[0].mxu0 %vm282_vm0, %v259_v59 }
  0x62   : > { %1725 = vmatpush3.bf16.xpose.msra.mxu0 %v2106_v21  ;;  %1390 = vmatprep.mubr.msk.f32.mxu0 %vm282_vm0, %v260_v61 }
  0x63   : > { %1726 = vmatprep.subr.bf16.mxu0 %v1976_v14 }
  0x65   : > { %1391 = vmatmul.mubr.msk.f32.gmra.mrb[2].mxu0 %vm282_vm0, %v261_v62 }
  0x66   : > { %1393 = vmatprep.mubr.msk.f32.mxu0 %vm282_vm0, %v262_v63 }
  0x69   : > { %1394 = vmatmul.mubr.msk.f32.gmra.mrb[4].mxu0 %vm282_vm0, %v263_v0 }
  0x6a   : > { %1728 = vmatpush3.bf16.xpose.msra.mxu0 %v2120_v25  ;;  %1396 = vmatprep.mubr.msk.f32.mxu0 %vm282_vm0, %v264_v1 }
  0x6b   : > { %1729 = vmatprep.subr.bf16.mxu0 %v1976_v14 }
  0x6d   : > { %1397 = vmatmul.mubr.msk.f32.gmra.mrb[6].mxu0 %vm282_vm0, %v265_v2 }
  0x6e   : > { %1466 = vmatprep.mubr.msk.f32.mxu0 %vm1977_vm2, %v1978_v60 }
  0x72   : > { %1731 = vmatpush3.bf16.xpose.msra.mxu0 %v2140_v31 }
  0x73   : > { %1732 = vmatprep.subr.bf16.mxu0 %v1976_v14 }
  0x7a   : > { %1734 = vmatpush3.bf16.xpose.msra.mxu0 %v2160_v37 }
  0x7b   : > { %1735 = vmatprep.subr.bf16.mxu0 %v1976_v14 }
  0x82   : > { %1737 = vmatpush3.bf16.xpose.msra.mxu0 %v2180_v43 }
  0x83   : > { %1738 = vmatprep.subr.bf16.mxu0 %v1976_v14 }
  0x8a   : > { %1740 = vmatpush3.bf16.xpose.msra.mxu0 %v2200_v49 }
  0x8b   : > { %1741 = vmatprep.subr.bf16.mxu0 %v1976_v14 }
  0x92   : > { %1743 = vmatpush3.bf16.xpose.msra.mxu0 %v2220_v55 }
  0x93   : > { %1744 = vmatprep.subr.bf16.mxu0 %v1976_v14 }
  0x9a   : > { %1746 = vmatpush3.bf16.xpose.msra.mxu0 %v2232_v58 }
  0x9b   : > { %1771 = vmatprep.subr.bf16.mxu0 %v1976_v14 }
 0x134   : > { %v1389_v3 = vpop.f32.mrb[0].mxu0 }
 0x135   : > { %v421_v4 = vpop.f32.mrb[1].mxu0 }
 0x136   : > { %v1197_v5 = vclamps-f32 %v421_v4, 1.0 }
 0x138   : > { %1432 = vmatmul.mubr.f32.vlgmr.msra.gmra.mrb[0].mxu1 %v1197_v5  ;;  %v1392_v6 = vpop.f32.mrb[2].mxu0 }
 0x139   : > { %1749 = vmatpush3.bf16.xpose.msra.mxu1 %v2106_v21  ;;  %1501 = vmatprep.mubr.msk.f32.mxu1 %vm1977_vm2, %v1978_v60  ;;  %v431_v7 = vpop.f32.mrb[3].mxu0 }
 0x13a   : > { %1750 = vmatprep.subr.bf16.mxu1 %v1976_v14 }
 0x13c   : > { %v2289_v8 = vpop.f32.mrb[4].mxu0 }
 0x13d   : > { %v2291_v9 = vpop.f32.mrb[5].mxu0 }
 0x140   : > { %v2293_v10 = vpop.f32.mrb[6].mxu0 }
 0x141   : > { %1752 = vmatpush3.bf16.xpose.msra.mxu1 %v2120_v25  ;;  %v2295_v11 = vpop.f32.mrb[7].mxu0 }
 0x142   : > { %1753 = vmatprep.subr.bf16.mxu1 %v1976_v14 }
 0x149   : > { %1755 = vmatpush3.bf16.xpose.msra.mxu1 %v2140_v31 }
 0x14a   : > { %1756 = vmatprep.subr.bf16.mxu1 %v1976_v14 }
 0x151   : > { %1758 = vmatpush3.bf16.xpose.msra.mxu1 %v2160_v37 }
 0x152   : > { %1759 = vmatprep.subr.bf16.mxu1 %v1976_v14 }
 0x159   : > { %1761 = vmatpush3.bf16.xpose.msra.mxu1 %v2180_v43 }
 0x15a   : > { %1762 = vmatprep.subr.bf16.mxu1 %v1976_v14 }
 0x161   : > { %1764 = vmatpush3.bf16.xpose.msra.mxu1 %v2200_v49 }
 0x162   : > { %1765 = vmatprep.subr.bf16.mxu1 %v1976_v14 }
 0x169   : > { %1767 = vmatpush3.bf16.xpose.msra.mxu1 %v2220_v55 }
 0x16a   : > { %1768 = vmatprep.subr.bf16.mxu1 %v1976_v14 }
 0x171   : > { %1770 = vmatpush3.bf16.xpose.msra.mxu1 %v2232_v58 }
 0x172   : > { %1795 = vmatprep.subr.bf16.mxu1 %v1976_v14 }
 0x20b   : > { %v553_v12 = vpop.f32.mrb[0].mxu1 }
 0x20c   : > { %v559_v13 = vadd.f32 %v1389_v3, %v553_v12  ;;  %v1433_v15 = vpop.f32.mrb[1].mxu1 }
 0x20e   : > { %v1198_v16 = vclamps-f32 %v559_v13, 1.0 }
 0x210   : > { %1467 = vmatmul.mubr.f32.vlgmr.msra.gmra.mrb[8].mxu0 %v1198_v16 }
 0x211   : > { %1773 = vmatpush3.bf16.xpose.msra.mxu0 %v2106_v21  ;;  %1536 = vmatprep.mubr.msk.f32.mxu0 %vm1977_vm2, %v1978_v60 }
 0x212   : > { %1774 = vmatprep.subr.bf16.mxu0 %v1976_v14 }
 0x219   : > { %1776 = vmatpush3.bf16.xpose.msra.mxu0 %v2120_v25 }
 0x21a   : > { %1777 = vmatprep.subr.bf16.mxu0 %v1976_v14 }
 0x221   : > { %1779 = vmatpush3.bf16.xpose.msra.mxu0 %v2140_v31 }
 0x222   : > { %1780 = vmatprep.subr.bf16.mxu0 %v1976_v14 }
 0x229   : > { %1782 = vmatpush3.bf16.xpose.msra.mxu0 %v2160_v37 }
 0x22a   : > { %1783 = vmatprep.subr.bf16.mxu0 %v1976_v14 }
 0x231   : > { %1785 = vmatpush3.bf16.xpose.msra.mxu0 %v2180_v43 }
 0x232   : > { %1786 = vmatprep.subr.bf16.mxu0 %v1976_v14 }
 0x239   : > { %1788 = vmatpush3.bf16.xpose.msra.mxu0 %v2200_v49 }
 0x23a   : > { %1789 = vmatprep.subr.bf16.mxu0 %v1976_v14 }
 0x241   : > { %1791 = vmatpush3.bf16.xpose.msra.mxu0 %v2220_v55 }
 0x242   : > { %1792 = vmatprep.subr.bf16.mxu0 %v1976_v14 }
 0x249   : > { %1794 = vmatpush3.bf16.xpose.msra.mxu0 %v2232_v58 }
 0x24a   : > { %1819 = vmatprep.subr.bf16.mxu0 %v1976_v14 }
 0x2e3   : > { %v628_v17 = vpop.f32.mrb[8].mxu0 }
 0x2e4   : > { %v634_v18 = vadd.f32 %v628_v17, %v431_v7  ;;  %v1468_v19 = vpop.f32.mrb[9].mxu0 }
 0x2e6   : > { %v1199_v20 = vclamps-f32 %v634_v18, 1.0 }
 0x2e8   : > { %1502 = vmatmul.mubr.f32.vlgmr.msra.gmra.mrb[2].mxu1 %v1199_v20 }
 0x2e9   : > { %1797 = vmatpush3.bf16.xpose.msra.mxu1 %v2106_v21  ;;  %1571 = vmatprep.mubr.msk.f32.mxu1 %vm1977_vm2, %v1978_v60 }
 0x2ea   : > { %1798 = vmatprep.subr.bf16.mxu1 %v1976_v14 }
 0x2f1   : > { %1800 = vmatpush3.bf16.xpose.msra.mxu1 %v2120_v25 }
 0x2f2   : > { %1801 = vmatprep.subr.bf16.mxu1 %v1976_v14 }
 0x2f9   : > { %1803 = vmatpush3.bf16.xpose.msra.mxu1 %v2140_v31 }
 0x2fa   : > { %1804 = vmatprep.subr.bf16.mxu1 %v1976_v14 }
 0x301   : > { %1806 = vmatpush3.bf16.xpose.msra.mxu1 %v2160_v37 }
 0x302   : > { %1807 = vmatprep.subr.bf16.mxu1 %v1976_v14 }
 0x309   : > { %1809 = vmatpush3.bf16.xpose.msra.mxu1 %v2180_v43 }
 0x30a   : > { %1810 = vmatprep.subr.bf16.mxu1 %v1976_v14 }
 0x311   : > { %1812 = vmatpush3.bf16.xpose.msra.mxu1 %v2200_v49 }
 0x312   : > { %1813 = vmatprep.subr.bf16.mxu1 %v1976_v14 }
 0x319   : > { %1815 = vmatpush3.bf16.xpose.msra.mxu1 %v2220_v55 }
 0x31a   : > { %1816 = vmatprep.subr.bf16.mxu1 %v1976_v14 }
 0x321   : > { %1818 = vmatpush3.bf16.xpose.msra.mxu1 %v2232_v58 }
 0x322   : > { %1843 = vmatprep.subr.bf16.mxu1 %v1976_v14 }
 0x3bb   : > { %v703_v22 = vpop.f32.mrb[2].mxu1 }
 0x3bc   : > { %v709_v23 = vadd.f32 %v1392_v6, %v703_v22  ;;  %v1503_v24 = vpop.f32.mrb[3].mxu1 }
 0x3be   : > { %v1200_v26 = vclamps-f32 %v709_v23, 1.0 }
 0x3c0   : > { %1537 = vmatmul.mubr.f32.vlgmr.msra.gmra.mrb[10].mxu0 %v1200_v26 }
 0x3c1   : > { %1821 = vmatpush3.bf16.xpose.msra.mxu0 %v2106_v21  ;;  %1606 = vmatprep.mubr.msk.f32.mxu0 %vm1977_vm2, %v1978_v60 }
 0x3c2   : > { %1822 = vmatprep.subr.bf16.mxu0 %v1976_v14 }
 0x3c9   : > { %1824 = vmatpush3.bf16.xpose.msra.mxu0 %v2120_v25 }
 0x3ca   : > { %1825 = vmatprep.subr.bf16.mxu0 %v1976_v14 }
 0x3d1   : > { %1827 = vmatpush3.bf16.xpose.msra.mxu0 %v2140_v31 }
 0x3d2   : > { %1828 = vmatprep.subr.bf16.mxu0 %v1976_v14 }
 0x3d9   : > { %1830 = vmatpush3.bf16.xpose.msra.mxu0 %v2160_v37 }
 0x3da   : > { %1831 = vmatprep.subr.bf16.mxu0 %v1976_v14 }
 0x3e1   : > { %1833 = vmatpush3.bf16.xpose.msra.mxu0 %v2180_v43 }
 0x3e2   : > { %1834 = vmatprep.subr.bf16.mxu0 %v1976_v14 }
 0x3e9   : > { %1836 = vmatpush3.bf16.xpose.msra.mxu0 %v2200_v49 }
 0x3ea   : > { %1837 = vmatprep.subr.bf16.mxu0 %v1976_v14 }
 0x3f1   : > { %1839 = vmatpush3.bf16.xpose.msra.mxu0 %v2220_v55 }
 0x3f2   : > { %1840 = vmatprep.subr.bf16.mxu0 %v1976_v14 }
 0x3f9   : > { %1842 = vmatpush3.bf16.xpose.msra.mxu0 %v2232_v58 }
 0x3fa   : > { %1867 = vmatprep.subr.bf16.mxu0 %v1976_v14 }
 0x493   : > { %v778_v27 = vpop.f32.mrb[10].mxu0 }
 0x494   : > { %v784_v28 = vadd.f32 %v778_v27, %v2291_v9  ;;  %v1538_v29 = vpop.f32.mrb[11].mxu0 }
 0x496   : > { %v1201_v30 = vclamps-f32 %v784_v28, 1.0 }
 0x498   : > { %1572 = vmatmul.mubr.f32.vlgmr.msra.gmra.mrb[4].mxu1 %v1201_v30 }
 0x499   : > { %1845 = vmatpush3.bf16.xpose.msra.mxu1 %v2106_v21  ;;  %1641 = vmatprep.mubr.msk.f32.mxu1 %vm1977_vm2, %v1978_v60 }
 0x49a   : > { %1846 = vmatprep.subr.bf16.mxu1 %v1976_v14 }
 0x4a1   : > { %1848 = vmatpush3.bf16.xpose.msra.mxu1 %v2120_v25 }
 0x4a2   : > { %1849 = vmatprep.subr.bf16.mxu1 %v1976_v14 }
 0x4a9   : > { %1851 = vmatpush3.bf16.xpose.msra.mxu1 %v2140_v31 }
 0x4aa   : > { %1852 = vmatprep.subr.bf16.mxu1 %v1976_v14 }
 0x4b1   : > { %1854 = vmatpush3.bf16.xpose.msra.mxu1 %v2160_v37 }
 0x4b2   : > { %1855 = vmatprep.subr.bf16.mxu1 %v1976_v14 }
 0x4b9   : > { %1857 = vmatpush3.bf16.xpose.msra.mxu1 %v2180_v43 }
 0x4ba   : > { %1858 = vmatprep.subr.bf16.mxu1 %v1976_v14 }
 0x4c1   : > { %1860 = vmatpush3.bf16.xpose.msra.mxu1 %v2200_v49 }
 0x4c2   : > { %1861 = vmatprep.subr.bf16.mxu1 %v1976_v14 }
 0x4c9   : > { %1863 = vmatpush3.bf16.xpose.msra.mxu1 %v2220_v55 }
 0x4ca   : > { %1864 = vmatprep.subr.bf16.mxu1 %v1976_v14  ;;  %v1013_v14 = vld [vmem:[%s2433_s3 + $0x8] sm:$0x3] }
 0x4cb   : > { %v1868_v34 = vpack.c.bf16 %v1013_v14, %v1012_v33 }
 0x4d1   : > { %1866 = vmatpush3.bf16.xpose.msra.mxu1 %v2232_v58 }
 0x56b   : > { %v853_v21 = vpop.f32.mrb[4].mxu1 }
 0x56c   : > { %v859_v25 = vadd.f32 %v2289_v8, %v853_v21  ;;  %v1573_v31 = vpop.f32.mrb[5].mxu1 }
 0x56e   : > { %v1202_v32 = vclamps-f32 %v859_v25, 1.0 }
 0x570   : > { %1607 = vmatmul.mubr.f32.vlgmr.msra.gmra.mrb[12].mxu0 %v1202_v32 }
 0x571   : > { %1648 = vmatprep.mubr.msk.f32.mxu0 %vm1977_vm2, %v1978_v60  ;;  %1869 = vmatpush3.bf16.xpose.msra.mxu0 %v1868_v34 }
 0x643   : > { %v928_v35 = vpop.f32.mrb[12].mxu0 }
 0x644   : > { %v934_v36 = vadd.f32 %v928_v35, %v2295_v11  ;;  %v1608_v37 = vpop.f32.mrb[13].mxu0 }
 0x646   : > { %v1203_v38 = vclamps-f32 %v934_v36, 1.0 }
 0x648   : > { %1642 = vmatmul.mubr.f32.vlgmr.msra.gmra.mrb[6].mxu1 %v1203_v38 }
 0x71b   : > { %v1003_v39 = vpop.f32.mrb[6].mxu1 }
 0x71c   : > { %v1009_v40 = vadd.f32 %v2293_v10, %v1003_v39  ;;  %v1643_v41 = vpop.f32.mrb[7].mxu1 }
 0x71e   : > { %v1204_v42 = vclamps-f32 %v1009_v40, 1.0 }
 0x720   : > { %1649 = vmatmul.mubr.f32.vlgmr.msra.gmra.mrb[14].mxu0 %v1204_v42 }
 0x7f3   : > { %v1080_v43 = vpop.f32.mrb[14].mxu0 }
 0x7f4   : > { %1085 = vst.msk [vmem:[%s257_s28] sm:$0xff] %vm1084_vm3, %v1080_v43  ;;  %v1650_v44 = vpop.f32.mrb[15].mxu0 }
 0x7f5   : > { %1925 = shalt.err (!%p1922_p5)
}
 0x7f6   : > { %s1926_s14 = scalar_lea.hbm %s2386_s7, 128  ;;  %s1930_s13 = scalar_lea.hbm %s2434_s4, 256 }
 0x7f7   : > { %p1927_p7 = scmp.ne.s32.totalorder %s2386_s7, %s1926_s14  ;;  %p1931_p12 = scmp.lt.u32.totalorder %s2386_s7, %s2434_s4 }
 0x7f8   : > { %p1932_p13 = scmp.lt.u32.totalorder %s1930_s13, %s1926_s14  ;;  %p1934_p1 = scmp.lt.u32.totalorder %s1926_s14, %s2386_s7 }
 0x7f9   : > { %p1928_p10 = pnand %p1927_p7, %p2043_p6 }
 0x7fa   : > { %p1933_p0 = por %p1932_p13, %p1931_p12 }
 0x7fb   : > { %p1929_p11 = pneg %p1928_p10 }
 0x7fc   : > { %p1935_p2 = por %p1934_p1, %p1933_p0 }
 0x7fe   : > { %p1936_p3 = pnand %p1935_p2, %p1929_p11 }
 0x800   : > { %1939 = shalt.err (!%p1936_p3)
}
 0x801   : > { %1870 = dma.vmem_to_hbm [thread:$0]  (%p2043_p6), %s2388_s30, 128, %s2386_s7, %s1087_s8  }
 0x802 PF: > { %s1112_s23 = sand.u32 1, %s1962_s15   ;;  %p1873_p4 = pnand %p1167_p9, %p2047_p8 }
 0x803   : > { %s1113_s27 = scalar_lea.sflag [#allocation5], %s1112_s23 }
 0x804   : > { %1957 = dma.done.wait (!%p1873_p4), %s1113_s27, 128  }
 0x805   : > { %1959 = vsyncadd (!%p1873_p4), %s1113_s27, 4294967168  ;;  %p14_p5 = scmp.ge.s32.totalorder %s2028_s21, 4   ;;  %s2439_s15 = smov %s1966_s16 }
 0x806   : > { %s2440_s16 = smov %s1970_s17  ;;  %s2441_s17 = smov %s2041_s24 }
 0x807   : > { %s2442_s18 = smov %s2028_s21  ;;  %16 = sbr.rel (!%p14_p5) target bundleno = 3 (0x3), region = 121 }
 0x80e   :  { %1118 = vsyncpa [#allocation5], 1 }
 0x80f   :  { %1120 = vsyncpa [#allocation5 + $0x1], 1 }

</bundles_post_ra>
